<compile_context>
chip_gen: v6e
topology: v6e:2x2x1
jax: 0.10.0
libtpu: 0.0.40
codegen_flags: <defaults>
</compile_context>

<pallas_src>
import functools
from collections import OrderedDict

import jax
import jax.numpy as jnp
import numpy as np
from jax.experimental import pallas as pl
from jax.experimental.pallas import tpu as pltpu


# Conservative double-buffered budget for the working tiles (fits every chip
# generation once vmem_limit_bytes is raised to 32 MiB below).
_VMEM_TILE_BUDGET_BYTES = 20 * 1024 * 1024


def _person_position_kernel(gid_ref, flag_ref, type_tab_ref, cls_tab_ref,
                            dms_lbl_ref, dms_w_ref, oms_lbl_ref, oms_w_ref,
                            *, weight_table, num_gt):
    """One (TB, N) tile of batch rows.

    gid_ref      : (TB, N) int32  matched gt index per proposal
    flag_ref     : (TB, N) int32  match flag (1 pos / 0 neg / -1 ignore)
    type_tab_ref : (TB, M) f32    gt label type (0: DMS, 1: OMS)
    cls_tab_ref  : (TB, M) f32    gt position class label
    outputs      : (TB, N) f32    dms/oms class label & weight maps
    """
    gid = gid_ref[...]
    flag = flag_ref[...]
    type_tab = type_tab_ref[...]
    cls_tab = cls_tab_ref[...]

    # take_row semantics: negative gt ids wrap Python-style (-1 -> last gt row),
    # matching torch fancy indexing on the reference path.
    idx = jnp.where(gid < 0, gid + num_gt, gid)

    # Fused gather: unrolled compare/select over the small static gt axis.
    # TODO(synk): for large M (>~32) switch this select chain to a one-hot
    # MXU lookup to keep the VALU slot from becoming the binding unit.
    gt_type = jnp.zeros(idx.shape, jnp.float32)
    gt_cls = jnp.zeros(idx.shape, jnp.float32)
    for m in range(num_gt):
        sel = idx == m
        gt_type = jnp.where(sel, type_tab[:, m:m + 1], gt_type)
        gt_cls = jnp.where(sel, cls_tab[:, m:m + 1], gt_cls)

    # Per-batch-row reductions along the proposal (lane) axis.
    pos_f = (flag > 0).astype(jnp.float32)
    has_pos = jnp.max(pos_f, axis=-1, keepdims=True) > 0.0                 # (TB,1)
    has_dms = jnp.max((gt_type == 0.0).astype(jnp.float32),
                      axis=-1, keepdims=True) > 0.0
    has_oms = jnp.max((gt_type == 1.0).astype(jnp.float32),
                      axis=-1, keepdims=True) > 0.0

    fg = gt_cls >= 0.0                                                     # (TB,N)
    num_bfg = jnp.sum(fg.astype(jnp.float32), axis=-1, keepdims=True)     # (TB,1)
    inv_bfg = pl.reciprocal(jnp.maximum(num_bfg, 1.0))                    # exact

    # Class-weight lookup (static constructor table, unrolled selects).
    if weight_table is None:
        # TODO(synk): the torch None-weight path indexes the full 2-D tensor
        # with a 1-D boolean mask (ill-formed in general); the per-row
        # 1/num_bfg reading is implemented instead.
        gt_w = jnp.ones_like(gt_cls)
    else:
        gt_w = jnp.zeros_like(gt_cls)
        for k, wk in enumerate(weight_table):
            gt_w = jnp.where(gt_cls == float(k), float(wk), gt_w)

    dms_active = jnp.logical_and(has_pos, has_dms)                         # (TB,1)
    oms_active = jnp.logical_and(has_pos, has_oms)
    w_fg = gt_w * inv_bfg                                                  # (TB,N)

    # Implicit (TB,1) / scalar broadcasts inside where: no full-tile temporaries.
    dms_lbl_ref[...] = jnp.where(dms_active, gt_cls, -1.0)
    oms_lbl_ref[...] = jnp.where(oms_active, gt_cls, -1.0)
    dms_w_ref[...] = jnp.where(jnp.logical_and(dms_active, fg), w_fg, 0.0)
    oms_w_ref[...] = jnp.where(jnp.logical_and(oms_active, fg), w_fg, 0.0)


class PersonPositionLabelFromMatch:
    """JAX/Pallas port of hat PersonPositionLabelFromMatch (label encoder)."""

    def __init__(self, dms_position_classes_weight, oms_position_classes_weight,
                 max_rows_per_block=512):
        if dms_position_classes_weight is None:
            self.dms_position_classes_weight = None
        else:
            self.dms_position_classes_weight = tuple(
                float(w) for w in np.atleast_1d(
                    np.asarray(dms_position_classes_weight, np.float32)))
        # Kept only for API parity: the torch forward reads the DMS weight
        # table in BOTH branches (including the OMS one) — reproduced here.
        self.oms_position_classes_weight = oms_position_classes_weight
        self.max_rows_per_block = max_rows_per_block

    @staticmethod
    def _rows_per_block(B, N, M, max_rows):
        # Double-buffered bytes per batch row: 2 int32 + 4 f32 (N-wide) streams
        # plus 2 f32 (M-wide) table streams.
        per_row = 2 * (6 * N + 2 * M) * 4
        tb = min(max_rows, max(8, _VMEM_TILE_BUDGET_BYTES // per_row))
        tb = max(8, (tb // 8) * 8)
        if tb >= B:
            # Whole batch fits: exact-size block, no batch padding. Split into
            # two blocks when cleanly possible so both v7x TensorCores get work.
            if B >= 16 and B % 16 == 0:
                return B // 2
            return B
        return tb

    def __call__(self, boxes, gt_boxes, match_pos_flag, match_gt_id, **kwargs):
        f32 = jnp.float32
        B, N = match_gt_id.shape
        M = gt_boxes.shape[1]

        gid = match_gt_id.astype(jnp.int32)
        flag = match_pos_flag.astype(jnp.int32)
        type_tab = gt_boxes[..., 5].astype(f32)      # (B, M) label type
        cls_tab = gt_boxes[..., 6].astype(f32)       # (B, M) position class

        TB = self._rows_per_block(B, N, M, self.max_rows_per_block)
        B_pad = ((B + TB - 1) // TB) * TB
        if B_pad != B:
            rpad = ((0, B_pad - B), (0, 0))
            gid = jnp.pad(gid, rpad)                              # pad idx 0
            flag = jnp.pad(flag, rpad)                            # flag 0 -> no positives
            type_tab = jnp.pad(type_tab, rpad, constant_values=-1.0)
            cls_tab = jnp.pad(cls_tab, rpad, constant_values=-1.0)

        kernel = functools.partial(
            _person_position_kernel,
            weight_table=self.dms_position_classes_weight,
            num_gt=M)

        row_spec = pl.BlockSpec((TB, N), lambda i: (i, 0))
        tab_spec = pl.BlockSpec((TB, M), lambda i: (i, 0))
        out_shape = tuple(jax.ShapeDtypeStruct((B_pad, N), f32) for _ in range(4))

        dms_lbl, dms_w, oms_lbl, oms_w = pl.pallas_call(
            kernel,
            out_shape=out_shape,
            grid_spec=pltpu.PrefetchScalarGridSpec(
                num_scalar_prefetch=0,
                grid=(B_pad // TB,),
                in_specs=[row_spec, row_spec, tab_spec, tab_spec],
                out_specs=[row_spec, row_spec, row_spec, row_spec],
            ),
            compiler_params=pltpu.CompilerParams(
                dimension_semantics=("parallel",),
                vmem_limit_bytes=32 * 1024 * 1024),
        )(gid, flag, type_tab, cls_tab)

        if B_pad != B:
            dms_lbl, dms_w = dms_lbl[:B], dms_w[:B]
            oms_lbl, oms_w = oms_lbl[:B], oms_w[:B]

        return OrderedDict(
            dms_cls_label=dms_lbl,
            dms_cls_label_weight=dms_w,
            oms_cls_label=oms_lbl,
            oms_cls_label_weight=oms_w,
        )


def _reference_forward(gt_boxes, match_pos_flag, match_gt_id, dms_weight):
    """Loop-based NumPy translation of the torch forward (non-None weight path)."""
    gt = np.asarray(gt_boxes, np.float32)
    flag = np.asarray(match_pos_flag)
    gid = np.asarray(match_gt_id)
    B, N = gid.shape
    M = gt.shape[1]
    idx = np.where(gid < 0, gid + M, gid)
    matched = gt[np.arange(B)[:, None], idx]
    dms_lbl = np.full((B, N), -1.0, np.float32)
    oms_lbl = np.full((B, N), -1.0, np.float32)
    dms_w = np.zeros((B, N), np.float32)
    oms_w = np.zeros((B, N), np.float32)
    table = None if dms_weight is None else np.asarray(dms_weight, np.float32)
    for i in range(B):
        if not np.any(flag[i] > 0):
            continue
        roi = matched[i]
        gt_cls = roi[:, 6]
        if np.any(roi[:, 5] == 0):
            dms_lbl[i] = gt_cls
            num_bfg = np.sum(dms_lbl[i] >= 0)
            if num_bfg > 0:
                fg = dms_lbl[i] >= 0
                w = (np.ones(int(fg.sum()), np.float32) if table is None
                     else table[gt_cls[gt_cls >= 0].astype(np.int64)])
                dms_w[i][fg] = w / num_bfg
        if np.any(roi[:, 5] == 1):
            oms_lbl[i] = gt_cls
            num_bfg = np.sum(oms_lbl[i] >= 0)
            if num_bfg > 0:
                fg = oms_lbl[i] >= 0
                w = (np.ones(int(fg.sum()), np.float32) if table is None
                     else table[gt_cls[gt_cls >= 0].astype(np.int64)])
                oms_w[i][fg] = w / num_bfg
    return dms_lbl, dms_w, oms_lbl, oms_w


if __name__ == "__main__":
    key = jax.random.PRNGKey(0)
    B, N, M = 2, 16, 8                  # batch, proposals, max gt boxes
    NUM_POS_CLASSES = 4
    dms_weight = [1.0, 2.0, 0.5, 1.5]
    oms_weight = [1.0, 1.0, 1.0, 1.0]

    k1, k2, k3, k4, k5, k6, k7, k8, k9 = jax.random.split(key, 9)

    # predicted boxes (only the shape matters for this encoder)
    xy = jax.random.uniform(k1, (B, N, 2), minval=0.0, maxval=48.0)
    wh = jax.random.uniform(k2, (B, N, 2), minval=8.0, maxval=32.0)
    boxes = jnp.concatenate([xy, xy + wh], axis=-1)

    # gt boxes: (B, M, 7) = (x1, y1, x2, y2, cls_label, label_type, pos_cls)
    gxy = jax.random.uniform(k3, (B, M, 2), minval=0.0, maxval=56.0)
    gwh = jax.random.uniform(k4, (B, M, 2), minval=4.0, maxval=24.0)
    cls_lbl = jax.random.randint(k5, (B, M, 1), 1, 3).astype(jnp.float32)
    lbl_type = jax.random.randint(k6, (B, M, 1), 0, 2).astype(jnp.float32)   # 0: DMS, 1: OMS
    pos_cls = jax.random.randint(k7, (B, M, 1), -1, NUM_POS_CLASSES).astype(jnp.float32)
    gt_boxes = jnp.concatenate([gxy, gxy + gwh, cls_lbl, lbl_type, pos_cls], axis=-1)

    match_gt_id = jax.random.randint(k8, (B, N), -1, M)
    match_pos_flag = jnp.where(
        match_gt_id >= 0,
        jnp.where(jax.random.uniform(k9, (B, N)) < 0.3, -1, 1),
        0).astype(jnp.int32)

    encoder = PersonPositionLabelFromMatch(dms_weight, oms_weight)
    out = encoder(boxes, gt_boxes, match_pos_flag, match_gt_id)
    jax.block_until_ready(list(out.values()))

    ref = _reference_forward(gt_boxes, match_pos_flag, match_gt_id, dms_weight)
    names = ["dms_cls_label", "dms_cls_label_weight",
             "oms_cls_label", "oms_cls_label_weight"]
    for name, r in zip(names, ref):
        assert out[name].shape == (B, N)
        np.testing.assert_allclose(np.asarray(out[name]), r, rtol=1e-6, atol=1e-6)

    print("KERNEL_OK")
</pallas_src>

<mosaic_0001>
module attributes {stable_mosaic.version = 11 : i64} {
  func.func @_person_position_kernel(%arg0: i32, %arg1: memref<2x16xi32, #tpu.memory_space<vmem>>, %arg2: memref<2x16xi32, #tpu.memory_space<vmem>>, %arg3: memref<2x8xf32, #tpu.memory_space<vmem>>, %arg4: memref<2x8xf32, #tpu.memory_space<vmem>>, %arg5: memref<2x16xf32, #tpu.memory_space<vmem>>, %arg6: memref<2x16xf32, #tpu.memory_space<vmem>>, %arg7: memref<2x16xf32, #tpu.memory_space<vmem>>, %arg8: memref<2x16xf32, #tpu.memory_space<vmem>>) attributes {dimension_semantics = [#tpu.dimension_semantics<parallel>], iteration_bounds = array<i64: 1>, scalar_prefetch = 0 : i64, scratch_operands = 0 : i64, tpu.core_type = #tpu.core_type<tc>, window_params = [{transform_indices = @transform_0, window_bounds = array<i64: 2, 16>}, {transform_indices = @transform_1, window_bounds = array<i64: 2, 16>}, {transform_indices = @transform_2, window_bounds = array<i64: 2, 8>}, {transform_indices = @transform_3, window_bounds = array<i64: 2, 8>}, {transform_indices = @transform_4, window_bounds = array<i64: 2, 16>}, {transform_indices = @transform_5, window_bounds = array<i64: 2, 16>}, {transform_indices = @transform_6, window_bounds = array<i64: 2, 16>}, {transform_indices = @transform_7, window_bounds = array<i64: 2, 16>}]} {
    %c0 = arith.constant 0 : index
    %c0_0 = arith.constant 0 : index
    %0 = vector.load %arg1[%c0, %c0_0] : memref<2x16xi32, #tpu.memory_space<vmem>>, vector<2x16xi32>
    %c0_1 = arith.constant 0 : index
    %c0_2 = arith.constant 0 : index
    %1 = vector.load %arg2[%c0_1, %c0_2] : memref<2x16xi32, #tpu.memory_space<vmem>>, vector<2x16xi32>
    %c0_3 = arith.constant 0 : index
    %c0_4 = arith.constant 0 : index
    %2 = vector.load %arg3[%c0_3, %c0_4] : memref<2x8xf32, #tpu.memory_space<vmem>>, vector<2x8xf32>
    %c0_5 = arith.constant 0 : index
    %c0_6 = arith.constant 0 : index
    %3 = vector.load %arg4[%c0_5, %c0_6] : memref<2x8xf32, #tpu.memory_space<vmem>>, vector<2x8xf32>
    %c0_i32 = arith.constant 0 : i32
    %4 = vector.broadcast %c0_i32 : i32 to vector<2x16xi32>
    %5 = arith.cmpi slt, %0, %4 : vector<2x16xi32>
    %c8_i32 = arith.constant 8 : i32
    %6 = vector.broadcast %c8_i32 : i32 to vector<2x16xi32>
    %7 = arith.addi %0, %6 : vector<2x16xi32>
    %8 = arith.select %5, %7, %0 : vector<2x16xi1>, vector<2x16xi32>
    %cst = arith.constant 0.000000e+00 : f32
    %9 = vector.broadcast %cst : f32 to vector<2x16xf32>
    %cst_7 = arith.constant 0.000000e+00 : f32
    %10 = vector.broadcast %cst_7 : f32 to vector<2x16xf32>
    %c0_i32_8 = arith.constant 0 : i32
    %11 = vector.broadcast %c0_i32_8 : i32 to vector<2x16xi32>
    %12 = arith.cmpi eq, %8, %11 : vector<2x16xi32>
    %13 = vector.extract_strided_slice %2 {offsets = [0, 0], sizes = [2, 1], strides = [1, 1]} : vector<2x8xf32> to vector<2x1xf32>
    %14 = vector.shape_cast %13 : vector<2x1xf32> to vector<2x1xf32>
    %15 = vector.broadcast %14 : vector<2x1xf32> to vector<2x16xf32>
    %16 = arith.select %12, %15, %9 : vector<2x16xi1>, vector<2x16xf32>
    %17 = vector.extract_strided_slice %3 {offsets = [0, 0], sizes = [2, 1], strides = [1, 1]} : vector<2x8xf32> to vector<2x1xf32>
    %18 = vector.shape_cast %17 : vector<2x1xf32> to vector<2x1xf32>
    %19 = vector.broadcast %18 : vector<2x1xf32> to vector<2x16xf32>
    %20 = arith.select %12, %19, %10 : vector<2x16xi1>, vector<2x16xf32>
    %c1_i32 = arith.constant 1 : i32
    %21 = vector.broadcast %c1_i32 : i32 to vector<2x16xi32>
    %22 = arith.cmpi eq, %8, %21 : vector<2x16xi32>
    %23 = vector.extract_strided_slice %2 {offsets = [0, 1], sizes = [2, 1], strides = [1, 1]} : vector<2x8xf32> to vector<2x1xf32>
    %24 = vector.shape_cast %23 : vector<2x1xf32> to vector<2x1xf32>
    %25 = vector.broadcast %24 : vector<2x1xf32> to vector<2x16xf32>
    %26 = arith.select %22, %25, %16 : vector<2x16xi1>, vector<2x16xf32>
    %27 = vector.extract_strided_slice %3 {offsets = [0, 1], sizes = [2, 1], strides = [1, 1]} : vector<2x8xf32> to vector<2x1xf32>
    %28 = vector.shape_cast %27 : vector<2x1xf32> to vector<2x1xf32>
    %29 = vector.broadcast %28 : vector<2x1xf32> to vector<2x16xf32>
    %30 = arith.select %22, %29, %20 : vector<2x16xi1>, vector<2x16xf32>
    %c2_i32 = arith.constant 2 : i32
    %31 = vector.broadcast %c2_i32 : i32 to vector<2x16xi32>
    %32 = arith.cmpi eq, %8, %31 : vector<2x16xi32>
    %33 = vector.extract_strided_slice %2 {offsets = [0, 2], sizes = [2, 1], strides = [1, 1]} : vector<2x8xf32> to vector<2x1xf32>
    %34 = vector.shape_cast %33 : vector<2x1xf32> to vector<2x1xf32>
    %35 = vector.broadcast %34 : vector<2x1xf32> to vector<2x16xf32>
    %36 = arith.select %32, %35, %26 : vector<2x16xi1>, vector<2x16xf32>
    %37 = vector.extract_strided_slice %3 {offsets = [0, 2], sizes = [2, 1], strides = [1, 1]} : vector<2x8xf32> to vector<2x1xf32>
    %38 = vector.shape_cast %37 : vector<2x1xf32> to vector<2x1xf32>
    %39 = vector.broadcast %38 : vector<2x1xf32> to vector<2x16xf32>
    %40 = arith.select %32, %39, %30 : vector<2x16xi1>, vector<2x16xf32>
    %c3_i32 = arith.constant 3 : i32
    %41 = vector.broadcast %c3_i32 : i32 to vector<2x16xi32>
    %42 = arith.cmpi eq, %8, %41 : vector<2x16xi32>
    %43 = vector.extract_strided_slice %2 {offsets = [0, 3], sizes = [2, 1], strides = [1, 1]} : vector<2x8xf32> to vector<2x1xf32>
    %44 = vector.shape_cast %43 : vector<2x1xf32> to vector<2x1xf32>
    %45 = vector.broadcast %44 : vector<2x1xf32> to vector<2x16xf32>
    %46 = arith.select %42, %45, %36 : vector<2x16xi1>, vector<2x16xf32>
    %47 = vector.extract_strided_slice %3 {offsets = [0, 3], sizes = [2, 1], strides = [1, 1]} : vector<2x8xf32> to vector<2x1xf32>
    %48 = vector.shape_cast %47 : vector<2x1xf32> to vector<2x1xf32>
    %49 = vector.broadcast %48 : vector<2x1xf32> to vector<2x16xf32>
    %50 = arith.select %42, %49, %40 : vector<2x16xi1>, vector<2x16xf32>
    %c4_i32 = arith.constant 4 : i32
    %51 = vector.broadcast %c4_i32 : i32 to vector<2x16xi32>
    %52 = arith.cmpi eq, %8, %51 : vector<2x16xi32>
    %53 = vector.extract_strided_slice %2 {offsets = [0, 4], sizes = [2, 1], strides = [1, 1]} : vector<2x8xf32> to vector<2x1xf32>
    %54 = vector.shape_cast %53 : vector<2x1xf32> to vector<2x1xf32>
    %55 = vector.broadcast %54 : vector<2x1xf32> to vector<2x16xf32>
    %56 = arith.select %52, %55, %46 : vector<2x16xi1>, vector<2x16xf32>
    %57 = vector.extract_strided_slice %3 {offsets = [0, 4], sizes = [2, 1], strides = [1, 1]} : vector<2x8xf32> to vector<2x1xf32>
    %58 = vector.shape_cast %57 : vector<2x1xf32> to vector<2x1xf32>
    %59 = vector.broadcast %58 : vector<2x1xf32> to vector<2x16xf32>
    %60 = arith.select %52, %59, %50 : vector<2x16xi1>, vector<2x16xf32>
    %c5_i32 = arith.constant 5 : i32
    %61 = vector.broadcast %c5_i32 : i32 to vector<2x16xi32>
    %62 = arith.cmpi eq, %8, %61 : vector<2x16xi32>
    %63 = vector.extract_strided_slice %2 {offsets = [0, 5], sizes = [2, 1], strides = [1, 1]} : vector<2x8xf32> to vector<2x1xf32>
    %64 = vector.shape_cast %63 : vector<2x1xf32> to vector<2x1xf32>
    %65 = vector.broadcast %64 : vector<2x1xf32> to vector<2x16xf32>
    %66 = arith.select %62, %65, %56 : vector<2x16xi1>, vector<2x16xf32>
    %67 = vector.extract_strided_slice %3 {offsets = [0, 5], sizes = [2, 1], strides = [1, 1]} : vector<2x8xf32> to vector<2x1xf32>
    %68 = vector.shape_cast %67 : vector<2x1xf32> to vector<2x1xf32>
    %69 = vector.broadcast %68 : vector<2x1xf32> to vector<2x16xf32>
    %70 = arith.select %62, %69, %60 : vector<2x16xi1>, vector<2x16xf32>
    %c6_i32 = arith.constant 6 : i32
    %71 = vector.broadcast %c6_i32 : i32 to vector<2x16xi32>
    %72 = arith.cmpi eq, %8, %71 : vector<2x16xi32>
    %73 = vector.extract_strided_slice %2 {offsets = [0, 6], sizes = [2, 1], strides = [1, 1]} : vector<2x8xf32> to vector<2x1xf32>
    %74 = vector.shape_cast %73 : vector<2x1xf32> to vector<2x1xf32>
    %75 = vector.broadcast %74 : vector<2x1xf32> to vector<2x16xf32>
    %76 = arith.select %72, %75, %66 : vector<2x16xi1>, vector<2x16xf32>
    %77 = vector.extract_strided_slice %3 {offsets = [0, 6], sizes = [2, 1], strides = [1, 1]} : vector<2x8xf32> to vector<2x1xf32>
    %78 = vector.shape_cast %77 : vector<2x1xf32> to vector<2x1xf32>
    %79 = vector.broadcast %78 : vector<2x1xf32> to vector<2x16xf32>
    %80 = arith.select %72, %79, %70 : vector<2x16xi1>, vector<2x16xf32>
    %c7_i32 = arith.constant 7 : i32
    %81 = vector.broadcast %c7_i32 : i32 to vector<2x16xi32>
    %82 = arith.cmpi eq, %8, %81 : vector<2x16xi32>
    %83 = vector.extract_strided_slice %2 {offsets = [0, 7], sizes = [2, 1], strides = [1, 1]} : vector<2x8xf32> to vector<2x1xf32>
    %84 = vector.shape_cast %83 : vector<2x1xf32> to vector<2x1xf32>
    %85 = vector.broadcast %84 : vector<2x1xf32> to vector<2x16xf32>
    %86 = arith.select %82, %85, %76 : vector<2x16xi1>, vector<2x16xf32>
    %87 = vector.extract_strided_slice %3 {offsets = [0, 7], sizes = [2, 1], strides = [1, 1]} : vector<2x8xf32> to vector<2x1xf32>
    %88 = vector.shape_cast %87 : vector<2x1xf32> to vector<2x1xf32>
    %89 = vector.broadcast %88 : vector<2x1xf32> to vector<2x16xf32>
    %90 = arith.select %82, %89, %80 : vector<2x16xi1>, vector<2x16xf32>
    %c0_i32_9 = arith.constant 0 : i32
    %91 = vector.broadcast %c0_i32_9 : i32 to vector<2x16xi32>
    %92 = arith.cmpi sgt, %1, %91 : vector<2x16xi32>
    %93 = arith.extui %92 : vector<2x16xi1> to vector<2x16xi32>
    %94 = arith.sitofp %93 : vector<2x16xi32> to vector<2x16xf32>
    %cst_10 = arith.constant dense<0xFF800000> : vector<2xf32>
    %95 = vector.multi_reduction <maximumf>, %94, %cst_10 [1] : vector<2x16xf32> to vector<2xf32>
    %96 = vector.shape_cast %95 : vector<2xf32> to vector<2x1xf32>
    %cst_11 = arith.constant 0.000000e+00 : f32
    %97 = vector.broadcast %cst_11 : f32 to vector<2x1xf32>
    %98 = arith.cmpf ogt, %96, %97 : vector<2x1xf32>
    %cst_12 = arith.constant 0.000000e+00 : f32
    %99 = vector.broadcast %cst_12 : f32 to vector<2x16xf32>
    %100 = arith.cmpf oeq, %86, %99 : vector<2x16xf32>
    %101 = arith.extui %100 : vector<2x16xi1> to vector<2x16xi32>
    %102 = arith.sitofp %101 : vector<2x16xi32> to vector<2x16xf32>
    %cst_13 = arith.constant dense<0xFF800000> : vector<2xf32>
    %103 = vector.multi_reduction <maximumf>, %102, %cst_13 [1] : vector<2x16xf32> to vector<2xf32>
    %104 = vector.shape_cast %103 : vector<2xf32> to vector<2x1xf32>
    %cst_14 = arith.constant 0.000000e+00 : f32
    %105 = vector.broadcast %cst_14 : f32 to vector<2x1xf32>
    %106 = arith.cmpf ogt, %104, %105 : vector<2x1xf32>
    %cst_15 = arith.constant 1.000000e+00 : f32
    %107 = vector.broadcast %cst_15 : f32 to vector<2x16xf32>
    %108 = arith.cmpf oeq, %86, %107 : vector<2x16xf32>
    %109 = arith.extui %108 : vector<2x16xi1> to vector<2x16xi32>
    %110 = arith.sitofp %109 : vector<2x16xi32> to vector<2x16xf32>
    %cst_16 = arith.constant dense<0xFF800000> : vector<2xf32>
    %111 = vector.multi_reduction <maximumf>, %110, %cst_16 [1] : vector<2x16xf32> to vector<2xf32>
    %112 = vector.shape_cast %111 : vector<2xf32> to vector<2x1xf32>
    %cst_17 = arith.constant 0.000000e+00 : f32
    %113 = vector.broadcast %cst_17 : f32 to vector<2x1xf32>
    %114 = arith.cmpf ogt, %112, %113 : vector<2x1xf32>
    %cst_18 = arith.constant 0.000000e+00 : f32
    %115 = vector.broadcast %cst_18 : f32 to vector<2x16xf32>
    %116 = arith.cmpf oge, %90, %115 : vector<2x16xf32>
    %117 = arith.extui %116 : vector<2x16xi1> to vector<2x16xi32>
    %118 = arith.sitofp %117 : vector<2x16xi32> to vector<2x16xf32>
    %cst_19 = arith.constant dense<0.000000e+00> : vector<2xf32>
    %119 = vector.multi_reduction <add>, %118, %cst_19 [1] : vector<2x16xf32> to vector<2xf32>
    %120 = vector.shape_cast %119 : vector<2xf32> to vector<2x1xf32>
    %cst_20 = arith.constant 1.000000e+00 : f32
    %121 = vector.broadcast %cst_20 : f32 to vector<2x1xf32>
    %122 = arith.maximumf %120, %121 : vector<2x1xf32>
    %123 = tpu.reciprocal %122 : vector<2x1xf32> -> vector<2x1xf32>
    %cst_21 = arith.constant 0.000000e+00 : f32
    %124 = vector.broadcast %cst_21 : f32 to vector<2x16xf32>
    %cst_22 = arith.constant 0.000000e+00 : f32
    %125 = vector.broadcast %cst_22 : f32 to vector<2x16xf32>
    %126 = arith.cmpf oeq, %90, %125 : vector<2x16xf32>
    %cst_23 = arith.constant 1.000000e+00 : f32
    %127 = vector.broadcast %cst_23 : f32 to vector<2x16xf32>
    %128 = arith.select %126, %127, %124 : vector<2x16xi1>, vector<2x16xf32>
    %cst_24 = arith.constant 1.000000e+00 : f32
    %129 = vector.broadcast %cst_24 : f32 to vector<2x16xf32>
    %130 = arith.cmpf oeq, %90, %129 : vector<2x16xf32>
    %cst_25 = arith.constant 2.000000e+00 : f32
    %131 = vector.broadcast %cst_25 : f32 to vector<2x16xf32>
    %132 = arith.select %130, %131, %128 : vector<2x16xi1>, vector<2x16xf32>
    %cst_26 = arith.constant 2.000000e+00 : f32
    %133 = vector.broadcast %cst_26 : f32 to vector<2x16xf32>
    %134 = arith.cmpf oeq, %90, %133 : vector<2x16xf32>
    %cst_27 = arith.constant 5.000000e-01 : f32
    %135 = vector.broadcast %cst_27 : f32 to vector<2x16xf32>
    %136 = arith.select %134, %135, %132 : vector<2x16xi1>, vector<2x16xf32>
    %cst_28 = arith.constant 3.000000e+00 : f32
    %137 = vector.broadcast %cst_28 : f32 to vector<2x16xf32>
    %138 = arith.cmpf oeq, %90, %137 : vector<2x16xf32>
    %cst_29 = arith.constant 1.500000e+00 : f32
    %139 = vector.broadcast %cst_29 : f32 to vector<2x16xf32>
    %140 = arith.select %138, %139, %136 : vector<2x16xi1>, vector<2x16xf32>
    %141 = arith.andi %98, %106 : vector<2x1xi1>
    %142 = arith.andi %98, %114 : vector<2x1xi1>
    %143 = vector.broadcast %123 : vector<2x1xf32> to vector<2x16xf32>
    %144 = arith.mulf %140, %143 : vector<2x16xf32>
    %cst_30 = arith.constant -1.000000e+00 : f32
    %145 = vector.shape_cast %141 : vector<2x1xi1> to vector<2x1xi1>
    %146 = vector.broadcast %145 : vector<2x1xi1> to vector<2x16xi1>
    %147 = vector.broadcast %cst_30 : f32 to vector<2x16xf32>
    %148 = arith.select %146, %90, %147 : vector<2x16xi1>, vector<2x16xf32>
    %c0_31 = arith.constant 0 : index
    %c0_32 = arith.constant 0 : index
    %149 = vector.load %arg5[%c0_31, %c0_32] : memref<2x16xf32, #tpu.memory_space<vmem>>, vector<2x16xf32>
    tpu.vector_store %arg5[%c0_31, %c0_32], %148 {strides = array<i32>} : memref<2x16xf32, #tpu.memory_space<vmem>>, vector<2x16xf32>,
    %cst_33 = arith.constant -1.000000e+00 : f32
    %150 = vector.shape_cast %142 : vector<2x1xi1> to vector<2x1xi1>
    %151 = vector.broadcast %150 : vector<2x1xi1> to vector<2x16xi1>
    %152 = vector.broadcast %cst_33 : f32 to vector<2x16xf32>
    %153 = arith.select %151, %90, %152 : vector<2x16xi1>, vector<2x16xf32>
    %c0_34 = arith.constant 0 : index
    %c0_35 = arith.constant 0 : index
    %154 = vector.load %arg7[%c0_34, %c0_35] : memref<2x16xf32, #tpu.memory_space<vmem>>, vector<2x16xf32>
    tpu.vector_store %arg7[%c0_34, %c0_35], %153 {strides = array<i32>} : memref<2x16xf32, #tpu.memory_space<vmem>>, vector<2x16xf32>,
    %155 = vector.broadcast %141 : vector<2x1xi1> to vector<2x16xi1>
    %156 = arith.andi %155, %116 : vector<2x16xi1>
    %cst_36 = arith.constant 0.000000e+00 : f32
    %157 = vector.broadcast %cst_36 : f32 to vector<2x16xf32>
    %158 = arith.select %156, %144, %157 : vector<2x16xi1>, vector<2x16xf32>
    %c0_37 = arith.constant 0 : index
    %c0_38 = arith.constant 0 : index
    %159 = vector.load %arg6[%c0_37, %c0_38] : memref<2x16xf32, #tpu.memory_space<vmem>>, vector<2x16xf32>
    tpu.vector_store %arg6[%c0_37, %c0_38], %158 {strides = array<i32>} : memref<2x16xf32, #tpu.memory_space<vmem>>, vector<2x16xf32>,
    %160 = vector.broadcast %142 : vector<2x1xi1> to vector<2x16xi1>
    %161 = arith.andi %160, %116 : vector<2x16xi1>
    %cst_39 = arith.constant 0.000000e+00 : f32
    %162 = vector.broadcast %cst_39 : f32 to vector<2x16xf32>
    %163 = arith.select %161, %144, %162 : vector<2x16xi1>, vector<2x16xf32>
    %c0_40 = arith.constant 0 : index
    %c0_41 = arith.constant 0 : index
    %164 = vector.load %arg8[%c0_40, %c0_41] : memref<2x16xf32, #tpu.memory_space<vmem>>, vector<2x16xf32>
    tpu.vector_store %arg8[%c0_40, %c0_41], %163 {strides = array<i32>} : memref<2x16xf32, #tpu.memory_space<vmem>>, vector<2x16xf32>,
    return
  }
  func.func @transform_0(%arg0: i32) -> (i32, i32) {
    %c0_i32 = arith.constant 0 : i32
    %c0_i32_0 = arith.constant 0 : i32
    return %arg0, %c0_i32 : i32, i32
  }
  func.func @transform_1(%arg0: i32) -> (i32, i32) {
    %c0_i32 = arith.constant 0 : i32
    %c0_i32_0 = arith.constant 0 : i32
    return %arg0, %c0_i32 : i32, i32
  }
  func.func @transform_2(%arg0: i32) -> (i32, i32) {
    %c0_i32 = arith.constant 0 : i32
    %c0_i32_0 = arith.constant 0 : i32
    return %arg0, %c0_i32 : i32, i32
  }
  func.func @transform_3(%arg0: i32) -> (i32, i32) {
    %c0_i32 = arith.constant 0 : i32
    %c0_i32_0 = arith.constant 0 : i32
    return %arg0, %c0_i32 : i32, i32
  }
  func.func @transform_4(%arg0: i32) -> (i32, i32) {
    %c0_i32 = arith.constant 0 : i32
    %c0_i32_0 = arith.constant 0 : i32
    return %arg0, %c0_i32 : i32, i32
  }
  func.func @transform_5(%arg0: i32) -> (i32, i32) {
    %c0_i32 = arith.constant 0 : i32
    %c0_i32_0 = arith.constant 0 : i32
    return %arg0, %c0_i32 : i32, i32
  }
  func.func @transform_6(%arg0: i32) -> (i32, i32) {
    %c0_i32 = arith.constant 0 : i32
    %c0_i32_0 = arith.constant 0 : i32
    return %arg0, %c0_i32 : i32, i32
  }
  func.func @transform_7(%arg0: i32) -> (i32, i32) {
    %c0_i32 = arith.constant 0 : i32
    %c0_i32_0 = arith.constant 0 : i32
    return %arg0, %c0_i32 : i32, i32
  }
}

</mosaic_0001>

<bundles_post_ra>
// kernel: tpu_custom_call.1
= control target key start
LH: loop header
LB: loop body
LE: loop exit
PB: predicated region body
PF: predicated region fallthrough
CT: control target
= control target key end

     0   :  { %13 = vsyncpa [#allocation3], 0  ;;  %s557_s0 = inlined_call_operand.hbm [shape: s32[2,16], index: 0, kind: input, shape index: {}]   ;;  %s558_s1 = inlined_call_operand.hbm [shape: s32[2,16], index: 1, kind: input, shape index: {}]   ;;  %s559_s2 = inlined_call_operand.vmem [shape: f32[2,8], index: 2, kind: input, shape index: {}]   ;;  %s560_s3 = inlined_call_operand.vmem [shape: f32[2,8], index: 3, kind: input, shape index: {}]   ;;  %s561_s4 = inlined_call_operand.hbm [shape: f32[2,16], index: 4, kind: output, shape index: {0}]   ;;  %s562_s5 = inlined_call_operand.hbm [shape: f32[2,16], index: 5, kind: output, shape index: {1}]   ;;  %s563_s6 = inlined_call_operand.hbm [shape: f32[2,16], index: 6, kind: output, shape index: {2}]   ;;  %s564_s7 = inlined_call_operand.hbm [shape: f32[2,16], index: 7, kind: output, shape index: {3}]  }
   0x1   :  { %14 = vsyncpa [#allocation6], 0 }
   0x2   :  { %15 = vsyncpa [#allocation4], 0 }
   0x3   :  { %16 = vsyncpa [#allocation9], 0 }
   0x4   :  { %17 = vsyncpa [#allocation12], 0  ;;  %s425_s24 = smov [#allocation2]   ;;  %s426_s26 = smov [#allocation5]  }
   0x5   :  { %s24_s25 = sshll.u32 %s425_s24, 4  ;;  %s34_s27 = sshll.u32 %s426_s26, 4  ;;  %s25_s25 = int_to_ptr.vmem [resolvable:$true] %s24_s25  ;;  %s35_s27 = int_to_ptr.vmem [resolvable:$true] %s34_s27 }
   0x6   :  { %s303_s28 = scalar_lea.vmem %s25_s25, 32  ;;  %p308_p1 = scmp.lt.s32.totalorder %s25_s25, %s25_s25 }
   0x7   :  { %p304_p0 = scmp.ne.s32.totalorder %s25_s25, %s303_s28  ;;  %p309_p2 = scmp.lt.s32.totalorder %s303_s28, %s303_s28 }
   0x9   :  { %p310_p3 = por %p309_p2, %p308_p1 }
   0xb   :  { %p311_p4 = pnand %p310_p3, %p304_p0 }
   0xd   :  { %314 = shalt.err (!%p311_p4)
}
   0xe   :  { %27 = dma.hbm_to_vmem [thread:$0]  %s557_s0, 32, %s25_s25, [#allocation3]  }
   0xf   :  { %s323_s8 = scalar_lea.vmem %s35_s27, 32  ;;  %p328_p6 = scmp.lt.s32.totalorder %s35_s27, %s35_s27 }
  0x10   :  { %p324_p5 = scmp.ne.s32.totalorder %s35_s27, %s323_s8  ;;  %p329_p7 = scmp.lt.s32.totalorder %s323_s8, %s323_s8 }
  0x12   :  { %p330_p8 = por %p329_p7, %p328_p6 }
  0x14   :  { %p331_p9 = pnand %p330_p8, %p324_p5 }
  0x16   :  { %334 = shalt.err (!%p331_p9)
}
  0x17   :  { %37 = dma.hbm_to_vmem [thread:$0]  %s558_s1, 32, %s35_s27, [#allocation6]  }
  0x18   :  { %415 = dma.done.wait [#allocation3], 32  }
  0x19   :  { %416 = vsyncadd [#allocation3], 4294967264 }
  0x1a   :  { %417 = dma.done.wait [#allocation6], 32  }
  0x1b   :  { %418 = vsyncadd [#allocation6], 4294967264  ;;  %v427_v0 = vmov 2   ;;  %v428_v1 = vmov 0   ;;  %v51_v2 = vld [vmem:[%s560_s3] sm:$0x3] }
  0x1c   :  { %278 = vset.pattern.permute.xlu1 %v427_v0  ;;  %276 = vset.pattern.permute.xlu0 %v428_v1  ;;  %v429_v3 = vmov 3   ;;  %v430_v4 = vmov 1   ;;  %v431_v5 = vmov 4   ;;  %v432_v6 = vmov 5   ;;  %v50_v7 = vld [vmem:[%s559_s2] sm:$0x3] }
  0x1d   :  { %86 = vperm.xlu1 %278, %v51_v2   ;;  %64 = vperm.xlu0 %276, %v51_v2   ;;  %v433_v8 = vmov 6   ;;  %v434_v9 = vmov 7   ;;  %v49_v10 = vld [vmem:[#allocation5] sm:$0x3]  ;;  %v435_v11 = vmov 0.0   ;;  %vm148_vm1 = vcmask 123904  }
  0x1e   :  { %vm145_vm0 = vcmp.gt.s32.totalorder %v49_v10, 0  ;;  %v48_v14 = vld [vmem:[#allocation2] sm:$0x3]  ;;  %s436_s2 = smov [#allocation11]   ;;  %s437_s13 = smov [#allocation7]  }
  0x1f   :  { %v257_v12 = vsel %vm145_vm0, 1.0, %v435_v11  ;;  %v53_v15 = vadd.s32 8, %v48_v14  ;;  %vm52_vm2 = vcmp.lt.s32.totalorder %v48_v14, 0  ;;  %s236_s3 = sshll.u32 %s436_s2, 4  ;;  %s206_s14 = sshll.u32 %s437_s13, 4  ;;  %s237_s3 = int_to_ptr.vmem [resolvable:$true] %s236_s3  ;;  %s207_s14 = int_to_ptr.vmem [resolvable:$true] %s206_s14 }
  0x20   :  { %v149_v13 = vsel %vm148_vm1, %v257_v12, -inf  ;;  %s438_s15 = smov [#allocation8]   ;;  %s439_s17 = smov [#allocation10]  }
  0x21   :  { %279 = vset.pattern.permute.xlu1 %v429_v3  ;;  %277 = vset.pattern.permute.xlu0 %v430_v4  ;;  %v54_v18 = vsel %vm52_vm2, %v53_v15, %v48_v14  ;;  %s216_s16 = sshll.u32 %s438_s15, 4  ;;  %s226_s18 = sshll.u32 %s439_s17, 4  ;;  %s217_s16 = int_to_ptr.vmem [resolvable:$true] %s216_s16  ;;  %s536_s18 = int_to_ptr.vmem [resolvable:$true] %s226_s18 }
  0x22   :  { %97 = vperm.xlu1 %279, %v51_v2   ;;  %75 = vperm.xlu0 %277, %v51_v2   ;;  %vm55_vm3 = vcmp.eq.s32.totalorder %v54_v18, 0  ;;  %vm68_vm4 = vcmp.eq.s32.totalorder %v54_v18, 1  ;;  %vm79_vm5 = vcmp.eq.s32.totalorder %v54_v18, 2  ;;  %vm90_vm6 = vcmp.eq.s32.totalorder %v54_v18, 3  ;;  %s335_s19 = scalar_lea.vmem %s237_s3, 32  ;;  %p340_p11 = scmp.lt.s32.totalorder %s237_s3, %s237_s3 }
  0x23   :  { %vm101_vm7 = vcmp.eq.s32.totalorder %v54_v18, 4  ;;  %vm112_vm8 = vcmp.eq.s32.totalorder %v54_v18, 5  ;;  %vm123_vm9 = vcmp.eq.s32.totalorder %v54_v18, 6  ;;  %vm134_vm10 = vcmp.eq.s32.totalorder %v54_v18, 7  ;;  %p336_p10 = scmp.ne.s32.totalorder %s237_s3, %s335_s19  ;;  %p341_p12 = scmp.lt.s32.totalorder %s335_s19, %s335_s19 }
  0x25   :  { %p342_p13 = por %p341_p12, %p340_p11 }
  0x26   :  { %280 = vset.pattern.permute.xlu1 %v431_v5  ;;  %281 = vset.pattern.permute.xlu0 %v432_v6 }
  0x27   :  { %108 = vperm.xlu1 %280, %v51_v2   ;;  %119 = vperm.xlu0 %281, %v51_v2   ;;  %p343_p0 = pnand %p342_p13, %p336_p10 }
  0x2b   :  { %282 = vset.pattern.permute.xlu1 %v433_v8  ;;  %284 = vset.pattern.permute.xlu0 %v428_v1 }
  0x2c   :  { %130 = vperm.xlu1 %282, %v51_v2   ;;  %58 = vperm.xlu0 %284, %v50_v7  }
  0x30   :  { %283 = vset.pattern.permute.xlu1 %v434_v9  ;;  %287 = vset.pattern.permute.xlu0 %v429_v3 }
  0x31   :  { %141 = vperm.xlu1 %283, %v51_v2   ;;  %92 = vperm.xlu0 %287, %v50_v7  }
  0x35   :  { %285 = vset.pattern.permute.xlu1 %v430_v4  ;;  %290 = vset.pattern.permute.xlu0 %v433_v8 }
  0x36   :  { %70 = vperm.xlu1 %285, %v50_v7   ;;  %125 = vperm.xlu0 %290, %v50_v7  }
  0x3a   :  { %286 = vset.pattern.permute.xlu1 %v427_v0  ;;  %292 = vset.pattern.permute.xlu0 %v434_v9 }
  0x3b   :  { %81 = vperm.xlu1 %286, %v50_v7  }
  0x3f   :  { %288 = vset.pattern.permute.xlu1 %v431_v5 }
  0x40   :  { %103 = vperm.xlu1 %288, %v50_v7  }
  0x44   :  { %289 = vset.pattern.permute.xlu1 %v432_v6 }
  0x45   :  { %114 = vperm.xlu1 %289, %v50_v7  }
  0x49   :  { %291 = vset.pattern.permute.xlu1 %v434_v9 }
  0x4a   :  { %136 = vperm.xlu1 %291, %v50_v7  }
  0x55   :  { %150 = vmax.xlane.f32.xlu0 %v149_v13 }
  0x98   :  { %v87_v16 = vpop.permute.xlu1 %86  ;;  %v65_v17 = vpop.permute.xlu0 %64 }
  0x99   :  { %v67_v20 = vsel %vm55_vm3, %v65_v17, 0.0 }
  0x9d   :  { %v98_v19 = vpop.permute.xlu1 %97  ;;  %v76_v21 = vpop.permute.xlu0 %75 }
  0x9e   :  { %v78_v22 = vsel %vm68_vm4, %v76_v21, %v67_v20 }
  0x9f   :  { %v89_v24 = vsel %vm79_vm5, %v87_v16, %v78_v22 }
  0xa0   :  { %v100_v25 = vsel %vm90_vm6, %v98_v19, %v89_v24 }
  0xa2   :  { %v109_v23 = vpop.permute.xlu1 %108  ;;  %v120_v28 = vpop.permute.xlu0 %119 }
  0xa3   :  { %v111_v27 = vsel %vm101_vm7, %v109_v23, %v100_v25 }
  0xa4   :  { %v122_v29 = vsel %vm112_vm8, %v120_v28, %v111_v27 }
  0xa7   :  { %v131_v26 = vpop.permute.xlu1 %130  ;;  %v59_v36 = vpop.permute.xlu0 %58 }
  0xa8   :  { %v133_v30 = vsel %vm123_vm9, %v131_v26, %v122_v29  ;;  %v61_v38 = vsel %vm55_vm3, %v59_v36, 0.0 }
  0xac   :  { %v142_v31 = vpop.permute.xlu1 %141  ;;  %v93_v42 = vpop.permute.xlu0 %92 }
  0xad   :  { %v502_v32 = vsel %vm134_vm10, %v142_v31, %v133_v30 }
  0xae   :  { %vm167_vm11 = vcmp.ge.f32.partialorder %v502_v32, 0.0  ;;  %vm175_vm14 = vcmp.eq.f32.partialorder %v502_v32, 0.0  ;;  %vm177_vm15 = vcmp.eq.f32.partialorder %v502_v32, 1.0  ;;  %vm179_vm0 = vcmp.eq.f32.partialorder %v502_v32, 2.0 }
  0xaf   :  { %v260_v33 = vsel %vm167_vm11, 1.0, %v435_v11  ;;  %v176_v57 = vsel %vm175_vm14, 1.0, %v435_v11  ;;  %vm181_vm2 = vcmp.eq.f32.partialorder %v502_v32, 3.0 }
  0xb0   :  { %v170_v34 = vsel %vm148_vm1, %v260_v33, 0.0  ;;  %v178_v59 = vsel %vm177_vm15, 2.0, %v176_v57 }
  0xb1   :  { %v71_v35 = vpop.permute.xlu1 %70  ;;  %171 = vadd.xlane.f32.xlu1 %v170_v34  ;;  %v126_v47 = vpop.permute.xlu0 %125  ;;  %v180_v60 = vsel %vm179_vm0, 0.5, %v178_v59 }
  0xb2   :  { %v73_v40 = vsel %vm68_vm4, %v71_v35, %v61_v38  ;;  %v182_v0 = vsel %vm181_vm2, 1.5, %v180_v60 }
  0xb6   :  { %v82_v37 = vpop.permute.xlu1 %81 }
  0xb7   :  { %v84_v41 = vsel %vm79_vm5, %v82_v37, %v73_v40 }
  0xb8   :  { %v95_v43 = vsel %vm90_vm6, %v93_v42, %v84_v41 }
  0xbb   :  { %v104_v39 = vpop.permute.xlu1 %103 }
  0xbc   :  { %v106_v45 = vsel %vm101_vm7, %v104_v39, %v95_v43 }
  0xc0   :  { %v115_v44 = vpop.permute.xlu1 %114 }
  0xc1   :  { %v117_v46 = vsel %vm112_vm8, %v115_v44, %v106_v45 }
  0xc2   :  { %v128_v48 = vsel %vm123_vm9, %v126_v47, %v117_v46 }
  0xc5   :  { %v137_v49 = vpop.permute.xlu1 %136 }
  0xc6   :  { %v139_v50 = vsel %vm134_vm10, %v137_v49, %v128_v48 }
  0xc7   :  { %vm160_vm12 = vcmp.eq.f32.partialorder %v139_v50, 1.0  ;;  %vm153_vm13 = vcmp.eq.f32.partialorder %v139_v50, 0.0 }
  0xc8   :  { %v259_v51 = vsel %vm160_vm12, 1.0, %v435_v11  ;;  %v258_v52 = vsel %vm153_vm13, 1.0, %v435_v11 }
  0xc9   :  { %v163_v53 = vsel %vm148_vm1, %v259_v51, -inf  ;;  %v156_v54 = vsel %vm148_vm1, %v258_v52, -inf }
  0xca   :  { %164 = vmax.xlane.f32.xlu1 %v163_v53  ;;  %157 = vmax.xlane.f32.xlu0 %v156_v54 }
  0xde   :  { %v151_v58 = vpop.xlane.xlu0 %150 }
  0xdf   :  { %vm152_vm3 = vcmp.gt.f32.partialorder %v151_v58, 0.0 }
 0x13a   :  { %v172_v55 = vpop.xlane.xlu1 %171 }
 0x13b   :  { %v173_v56 = vmax.f32 %v172_v55, 1.0 }
 0x13d   :  { %293 = vrcp.f32 %v173_v56 }
 0x14a   :  { %v294_v61 = vpop.eup %293 }
 0x14b   :  { %v185_v1 = vmul.f32 %v294_v61, %v182_v0 }
 0x153   :  { %v165_v62 = vpop.xlane.xlu1 %164  ;;  %v158_v63 = vpop.xlane.xlu0 %157 }
 0x154   :  { %vm166_vm4 = vcmp.gt.f32.partialorder %v165_v62, 0.0  ;;  %vm159_vm5 = vcmp.gt.f32.partialorder %v158_v63, 0.0 }
 0x155   :  { %vm184_vm6 = vmand %vm152_vm3, %vm166_vm4 }
 0x156   :  { %v192_v2 = vsel %vm184_vm6, %v502_v32, -1.0  ;;  %vm197_vm7 = vmand %vm184_vm6, %vm167_vm11 }
 0x157   :  { %v198_v3 = vsel %vm197_vm7, %v185_v1, 0.0  ;;  %193 = vst.msk [vmem:[#allocation10] sm:$0x3] %vm148_vm1, %v192_v2  ;;  %vm183_vm8 = vmand %vm152_vm3, %vm159_vm5 }
 0x158   :  { %199 = vst.msk [vmem:[#allocation11] sm:$0x3] %vm148_vm1, %v198_v3  ;;  %v188_v4 = vsel %vm183_vm8, %v502_v32, -1.0  ;;  %vm194_vm9 = vmand %vm183_vm8, %vm167_vm11 }
 0x159   :  { %v195_v5 = vsel %vm194_vm9, %v185_v1, 0.0  ;;  %189 = vst.msk [vmem:[#allocation7] sm:$0x3] %vm148_vm1, %v188_v4 }
 0x15a   :  { %346 = shalt.err (!%p343_p0)
}
 0x15b   :  { %239 = dma.vmem_to_hbm [thread:$0]  %s237_s3, 32, %s564_s7, [#allocation12]   ;;  %196 = vst.msk [vmem:[#allocation8] sm:$0x3] %vm148_vm1, %v195_v5 }
 0x15c   :  { %s355_s22 = scalar_lea.vmem %s207_s14, 32  ;;  %p360_p2 = scmp.lt.s32.totalorder %s207_s14, %s207_s14 }
 0x15d   :  { %p356_p1 = scmp.ne.s32.totalorder %s207_s14, %s355_s22  ;;  %p361_p3 = scmp.lt.s32.totalorder %s355_s22, %s355_s22 }
 0x15f   :  { %p362_p4 = por %p361_p3, %p360_p2 }
 0x161   :  { %p363_p5 = pnand %p362_p4, %p356_p1 }
 0x163   :  { %366 = shalt.err (!%p363_p5)
}
 0x164   :  { %209 = dma.vmem_to_hbm [thread:$0]  %s207_s14, 32, %s561_s4, [#allocation4]  }
 0x165   :  { %s375_s25 = scalar_lea.vmem %s217_s16, 32  ;;  %p380_p7 = scmp.lt.s32.totalorder %s217_s16, %s217_s16 }
 0x166   :  { %p376_p6 = scmp.ne.s32.totalorder %s217_s16, %s375_s25  ;;  %p381_p8 = scmp.lt.s32.totalorder %s375_s25, %s375_s25 }
 0x168   :  { %p382_p9 = por %p381_p8, %p380_p7 }
 0x16a   :  { %p383_p10 = pnand %p382_p9, %p376_p6 }
 0x16c   :  { %386 = shalt.err (!%p383_p10)
}
 0x16d   :  { %219 = dma.vmem_to_hbm [thread:$0]  %s217_s16, 32, %s562_s5, [#allocation9]  }
 0x16e   :  { %s395_s27 = scalar_lea.vmem %s536_s18, 32  ;;  %p400_p12 = scmp.lt.s32.totalorder %s536_s18, %s536_s18 }
 0x16f   :  { %p396_p11 = scmp.ne.s32.totalorder %s536_s18, %s395_s27  ;;  %p401_p13 = scmp.lt.s32.totalorder %s395_s27, %s395_s27 }
 0x171   :  { %p402_p0 = por %p401_p13, %p400_p12 }
 0x173   :  { %p403_p1 = pnand %p402_p0, %p396_p11 }
 0x175   :  { %406 = shalt.err (!%p403_p1)
}
 0x176   :  { %229 = dma.vmem_to_hbm [thread:$0]  %s536_s18, 32, %s563_s6, [#allocation9]  }
 0x177   :  { %419 = dma.done.wait [#allocation4], 32  }
 0x178   :  { %420 = vsyncadd [#allocation4], 4294967264 }
 0x179   :  { %421 = dma.done.wait [#allocation9], 64  }
 0x17a   :  { %422 = vsyncadd [#allocation9], 4294967232 }
 0x17b   :  { %423 = dma.done.wait [#allocation12], 32  }
 0x17c   :  { %424 = vsyncadd [#allocation12], 4294967264 }
 0x17d   :  { %252 = vsyncpa [#allocation3], 1 }
 0x17e   :  { %253 = vsyncpa [#allocation6], 1 }
 0x17f   :  { %254 = vsyncpa [#allocation4], 1 }
 0x180   :  { %255 = vsyncpa [#allocation9], 1 }
 0x181   :  { %256 = vsyncpa [#allocation12], 1 }

</bundles_post_ra>
